<compile_context>
chip_gen: v7x
topology: tpu7x:2x2x1
jax: 0.10.0
libtpu: 0.0.40
codegen_flags: <defaults>
</compile_context>

<pallas_src>
import jax
import jax.numpy as jnp
from jax.experimental import pallas as pl
from jax.experimental.pallas import tpu as pltpu


def _round_up(v, m):
    return ((v + m - 1) // m) * m


# ----------------------------- Pallas kernel ------------------------------ #
def _fused_gcn_kernel(adj_ref, x_ref, w_ref, b_ref, o_ref,
                      act_ref, xw_ref, acc_ref):
    l = pl.program_id(0)            # layer            (serial)
    i = pl.program_id(1)            # output-row tile  (serial: cross-layer dep)
    k = pl.program_id(2)            # contraction tile (serial: accumulator)
    nk = pl.num_programs(2)
    tm, tk = adj_ref.shape

    # ---- layer prologue: XW = act @ W[l], computed ONCE per layer ---------- #
    @pl.when(jnp.logical_and(i == 0, k == 0))
    def _():
        @pl.when(l == 0)
        def _():
            act_ref[...] = x_ref[...]              # seed activation with input
        xw_ref[...] = jnp.dot(act_ref[...], w_ref[0],
                              preferred_element_type=jnp.float32)

    # ---- accumulate the Â @ XW row tile over k ----------------------------- #
    @pl.when(k == 0)
    def _():
        acc_ref[...] = jnp.zeros_like(acc_ref)

    koff = pl.multiple_of(k * tk, tk)
    acc_ref[...] += jnp.dot(adj_ref[...], xw_ref[pl.ds(koff, tk), :],
                            preferred_element_type=jnp.float32)

    # ---- epilogue: bias + ReLU, update resident activation, emit output ---- #
    @pl.when(k == nk - 1)
    def _():
        h = jnp.maximum(acc_ref[...] + b_ref[0], 0.0)
        ioff = pl.multiple_of(i * tm, tm)
        act_ref[pl.ds(ioff, tm), :] = h            # next layer reads this
        o_ref[...] = h.astype(o_ref.dtype)         # last layer's write survives


def _fused_territory_gnn(adj_p, x_p, ws, bs):
    """adj_p: [Np,Np] f32, x_p: [Np,P] f32, ws: [L,P,P], bs: [L,1,P]."""
    num_layers, P, _ = ws.shape
    n_pad = adj_p.shape[0]

    # Tile plan: fully-resident Â for small graphs, (256, 512) tiles otherwise.
    if n_pad <= 512:
        tm, tk = n_pad, n_pad
    else:
        tm, tk = 256, 512
    grid = (num_layers, n_pad // tm, n_pad // tk)

    flops = num_layers * (2 * n_pad * P * P + 2 * n_pad * n_pad * P)
    bytes_accessed = 4 * (n_pad * n_pad + n_pad * P
                          + num_layers * (P * P + P)
                          + num_layers * n_pad * P)
    vmem_est = 4 * (2 * tm * tk           # Â tiles (double buffered)
                    + n_pad * P           # resident x
                    + 2 * (P * P + P)     # W / b (double buffered)
                    + 2 * tm * P          # output tile (double buffered)
                    + 2 * n_pad * P       # act + xw scratches
                    + tm * P)             # f32 accumulator
    vmem_limit = int(min(60 * 2**20, max(2 * vmem_est, 8 * 2**20)))

    return pl.pallas_call(
        _fused_gcn_kernel,
        out_shape=jax.ShapeDtypeStruct((n_pad, P), jnp.float32),
        grid_spec=pltpu.PrefetchScalarGridSpec(
            num_scalar_prefetch=0,
            grid=grid,
            in_specs=[
                pl.BlockSpec((tm, tk), lambda l, i, k: (i, k)),       # Â tile
                pl.BlockSpec((n_pad, P), lambda l, i, k: (0, 0)),     # x (resident)
                pl.BlockSpec((1, P, P), lambda l, i, k: (l, 0, 0)),   # W[l]
                pl.BlockSpec((1, 1, P), lambda l, i, k: (l, 0, 0)),   # b[l]
            ],
            out_specs=pl.BlockSpec((tm, P), lambda l, i, k: (i, 0)),
            scratch_shapes=[
                pltpu.VMEM((n_pad, P), jnp.float32),  # activation (persists over layers)
                pltpu.VMEM((n_pad, P), jnp.float32),  # XW of the current layer
                pltpu.VMEM((tm, P), jnp.float32),     # f32 accumulator
            ],
        ),
        compiler_params=pltpu.CompilerParams(
            dimension_semantics=("arbitrary", "arbitrary", "arbitrary"),
            vmem_limit_bytes=vmem_limit,
        ),
        cost_estimate=pl.CostEstimate(flops=flops, transcendentals=0,
                                      bytes_accessed=bytes_accessed),
    )(adj_p, x_p, ws, bs)


# ------------------------------- Glue (JAX) -------------------------------- #
def gcn_normalized_adjacency(edge_index, num_nodes):
    """Dense Â = D^{-1/2}(A + I)D^{-1/2}, aggregation at edge target (PyG)."""
    src = edge_index[0]
    dst = edge_index[1]
    loops = jnp.arange(num_nodes, dtype=edge_index.dtype)
    src = jnp.concatenate([src, loops])
    dst = jnp.concatenate([dst, loops])
    deg = jnp.zeros((num_nodes,), jnp.float32).at[dst].add(1.0)
    dinv = jnp.where(deg > 0, jax.lax.rsqrt(deg), 0.0)
    norm = dinv[src] * dinv[dst]
    # message from src, aggregated at dst:  Â[dst, src] = norm
    adj = jnp.zeros((num_nodes, num_nodes), jnp.float32).at[dst, src].add(norm)
    return adj


def init_territory_gnn_params(key, in_channels, hidden_channels, num_layers=2):
    """Glorot-style weights; small random biases (PyG default is zeros) so the
    bias-add path is actually exercised in the correctness check."""
    params = []
    dims = [in_channels] + [hidden_channels] * num_layers
    for i in range(num_layers):
        key, wk, bk = jax.random.split(key, 3)
        fan_in, fan_out = dims[i], dims[i + 1]
        limit = (6.0 / (fan_in + fan_out)) ** 0.5
        w = jax.random.uniform(wk, (fan_in, fan_out), jnp.float32, -limit, limit)
        b = 0.1 * jax.random.normal(bk, (1, fan_out), jnp.float32)
        params.append((w, b))
    return params


def territory_gnn_forward(x, edge_index, params):
    """Fused multi-layer GCN forward via one Pallas kernel call."""
    n, c = x.shape
    hidden = params[0][0].shape[1]

    P = _round_up(max(c, hidden), 128)               # lane-dense channel dim
    n8 = _round_up(n, 8)
    n_pad = n8 if n8 <= 512 else _round_up(n, 512)   # matches the tile plan

    adj = gcn_normalized_adjacency(edge_index, n)
    adj_p = jnp.zeros((n_pad, n_pad), jnp.float32).at[:n, :n].set(adj)
    x_p = jnp.zeros((n_pad, P), jnp.float32).at[:n, :c].set(x)
    ws = jnp.stack([
        jnp.zeros((P, P), jnp.float32).at[:w.shape[0], :w.shape[1]].set(w)
        for w, _ in params])
    bs = jnp.stack([
        jnp.zeros((1, P), jnp.float32).at[:, :b.shape[1]].set(b)
        for _, b in params])

    out = _fused_territory_gnn(adj_p, x_p, ws, bs)
    return out[:n, :hidden]


def territory_gnn_reference(x, edge_index, params):
    """Pure-JAX reference for correctness check."""
    adj = gcn_normalized_adjacency(edge_index, x.shape[0])
    for w, b in params:
        x = jnp.maximum(adj @ (x @ w) + b, 0.0)
    return x


# --------------------------------- Driver ---------------------------------- #
if __name__ == "__main__":
    key = jax.random.PRNGKey(0)

    # --- small case (the module's nominal sizes) ---------------------------- #
    num_nodes, in_channels, hidden_channels, num_layers = 16, 4, 32, 2
    key, xk = jax.random.split(key)
    x = jax.random.normal(xk, (num_nodes, in_channels), jnp.float32)
    idx = jnp.arange(num_nodes, dtype=jnp.int32)
    nxt = (idx + 1) % num_nodes
    edge_index = jnp.stack(
        [jnp.concatenate([idx, nxt]), jnp.concatenate([nxt, idx])], axis=0)
    key, pk = jax.random.split(key)
    params = init_territory_gnn_params(pk, in_channels, hidden_channels, num_layers)

    out = jax.block_until_ready(territory_gnn_forward(x, edge_index, params))
    ref = territory_gnn_reference(x, edge_index, params)
    assert out.shape == (num_nodes, hidden_channels)
    assert jnp.allclose(out, ref, atol=1e-5, rtol=1e-5)

    # --- larger case to exercise the tiled (grid) path ----------------------- #
    n2, c2, h2 = 600, 4, 32
    key, xk2, ek2, pk2 = jax.random.split(key, 4)
    x2 = jax.random.normal(xk2, (n2, c2), jnp.float32)
    e2 = jax.random.randint(ek2, (2, 4 * n2), 0, n2, dtype=jnp.int32)
    params2 = init_territory_gnn_params(pk2, c2, h2, num_layers)
    out2 = jax.block_until_ready(territory_gnn_forward(x2, e2, params2))
    ref2 = territory_gnn_reference(x2, e2, params2)
    assert out2.shape == (n2, h2)
    assert jnp.allclose(out2, ref2, atol=1e-4, rtol=1e-4)

    print("KERNEL_OK")
</pallas_src>

<mosaic_0001>
module attributes {stable_mosaic.version = 11 : i64} {
  func.func @_fused_gcn_kernel(%arg0: i32, %arg1: i32, %arg2: i32, %arg3: memref<16x16xf32, #tpu.memory_space<vmem>>, %arg4: memref<16x128xf32, #tpu.memory_space<vmem>>, %arg5: memref<1x128x128xf32, #tpu.memory_space<vmem>>, %arg6: memref<1x1x128xf32, #tpu.memory_space<vmem>>, %arg7: memref<16x128xf32, #tpu.memory_space<vmem>>, %arg8: memref<16x128xf32, #tpu.memory_space<vmem>>, %arg9: memref<16x128xf32, #tpu.memory_space<vmem>>, %arg10: memref<16x128xf32, #tpu.memory_space<vmem>>) attributes {dimension_semantics = [#tpu.dimension_semantics<arbitrary>, #tpu.dimension_semantics<arbitrary>, #tpu.dimension_semantics<arbitrary>], iteration_bounds = array<i64: 2, 1, 1>, scalar_prefetch = 0 : i64, scratch_operands = 3 : i64, tpu.core_type = #tpu.core_type<tc>, window_params = [{transform_indices = @transform_0, window_bounds = array<i64: 16, 16>}, {pipeline_mode = #tpu.pipeline_mode<synchronous>, transform_indices = @transform_1, window_bounds = array<i64: 16, 128>}, {transform_indices = @transform_2, window_bounds = array<i64: 1, 128, 128>}, {transform_indices = @transform_3, window_bounds = array<i64: 1, 1, 128>}, {transform_indices = @transform_4, window_bounds = array<i64: 16, 128>}]} {
    %c0_i32 = arith.constant 0 : i32
    %0 = arith.cmpi eq, %arg1, %c0_i32 : i32
    %c0_i32_0 = arith.constant 0 : i32
    %1 = arith.cmpi eq, %arg2, %c0_i32_0 : i32
    %2 = arith.andi %0, %1 : i1
    %3 = arith.extui %2 : i1 to i32
    %c0_i32_1 = arith.constant 0 : i32
    %4 = arith.cmpi ne, %3, %c0_i32_1 : i32
    scf.if %4 {
      %c0_i32_12 = arith.constant 0 : i32
      %20 = arith.cmpi eq, %arg0, %c0_i32_12 : i32
      %21 = arith.extui %20 : i1 to i32
      %c0_i32_13 = arith.constant 0 : i32
      %22 = arith.cmpi ne, %21, %c0_i32_13 : i32
      scf.if %22 {
        %c0_22 = arith.constant 0 : index
        %c0_23 = arith.constant 0 : index
        %28 = vector.load %arg4[%c0_22, %c0_23] : memref<16x128xf32, #tpu.memory_space<vmem>>, vector<16x128xf32>
        %c0_24 = arith.constant 0 : index
        %c0_25 = arith.constant 0 : index
        %29 = vector.load %arg8[%c0_24, %c0_25] : memref<16x128xf32, #tpu.memory_space<vmem>>, vector<16x128xf32>
        tpu.vector_store %arg8[%c0_24, %c0_25], %28 {strides = array<i32>} : memref<16x128xf32, #tpu.memory_space<vmem>>, vector<16x128xf32>,
      } else {
      }
      %c0_14 = arith.constant 0 : index
      %c0_15 = arith.constant 0 : index
      %23 = vector.load %arg8[%c0_14, %c0_15] : memref<16x128xf32, #tpu.memory_space<vmem>>, vector<16x128xf32>
      %c0_16 = arith.constant 0 : index
      %c0_17 = arith.constant 0 : index
      %c0_18 = arith.constant 0 : index
      %24 = vector.load %arg5[%c0_16, %c0_17, %c0_18] : memref<1x128x128xf32, #tpu.memory_space<vmem>>, vector<1x128x128xf32>
      %25 = vector.shape_cast %24 : vector<1x128x128xf32> to vector<128x128xf32>
      %cst_19 = arith.constant dense<0.000000e+00> : vector<16x128xf32>
      %26 = tpu.matmul %23, %25, %cst_19 {dimension_numbers = #tpu.dot_dimension_numbers<[1], [0], [0], [1], [0, 0, 1, 1], [], []>} : vector<16x128xf32>, vector<128x128xf32>, vector<16x128xf32> -> vector<16x128xf32>
      %c0_20 = arith.constant 0 : index
      %c0_21 = arith.constant 0 : index
      %27 = vector.load %arg9[%c0_20, %c0_21] : memref<16x128xf32, #tpu.memory_space<vmem>>, vector<16x128xf32>
      tpu.vector_store %arg9[%c0_20, %c0_21], %26 {strides = array<i32>} : memref<16x128xf32, #tpu.memory_space<vmem>>, vector<16x128xf32>,
    } else {
    }
    %c0_i32_2 = arith.constant 0 : i32
    %5 = arith.cmpi eq, %arg2, %c0_i32_2 : i32
    %6 = arith.extui %5 : i1 to i32
    %c0_i32_3 = arith.constant 0 : i32
    %7 = arith.cmpi ne, %6, %c0_i32_3 : i32
    scf.if %7 {
      %cst_12 = arith.constant 0.000000e+00 : f32
      %20 = vector.broadcast %cst_12 : f32 to vector<16x128xf32>
      %c0_13 = arith.constant 0 : index
      %c0_14 = arith.constant 0 : index
      %21 = vector.load %arg10[%c0_13, %c0_14] : memref<16x128xf32, #tpu.memory_space<vmem>>, vector<16x128xf32>
      tpu.vector_store %arg10[%c0_13, %c0_14], %20 {strides = array<i32>} : memref<16x128xf32, #tpu.memory_space<vmem>>, vector<16x128xf32>,
    } else {
    }
    %c16_i32 = arith.constant 16 : i32
    %8 = arith.muli %arg2, %c16_i32 : i32
    %9 = tpu.assume_multiple %8, 16 : i32
    %c0 = arith.constant 0 : index
    %c0_4 = arith.constant 0 : index
    %10 = vector.load %arg10[%c0, %c0_4] : memref<16x128xf32, #tpu.memory_space<vmem>>, vector<16x128xf32>
    %c0_5 = arith.constant 0 : index
    %c0_6 = arith.constant 0 : index
    %11 = vector.load %arg3[%c0_5, %c0_6] : memref<16x16xf32, #tpu.memory_space<vmem>>, vector<16x16xf32>
    %12 = arith.index_cast %9 : i32 to index
    %c0_7 = arith.constant 0 : index
    %13 = vector.load %arg9[%12, %c0_7] : memref<16x128xf32, #tpu.memory_space<vmem>>, vector<16x128xf32>
    %cst = arith.constant dense<0.000000e+00> : vector<16x128xf32>
    %14 = tpu.matmul %11, %13, %cst {dimension_numbers = #tpu.dot_dimension_numbers<[1], [0], [0], [1], [0, 0, 1, 1], [], []>} : vector<16x16xf32>, vector<16x128xf32>, vector<16x128xf32> -> vector<16x128xf32>
    %15 = arith.addf %10, %14 : vector<16x128xf32>
    %c0_8 = arith.constant 0 : index
    %c0_9 = arith.constant 0 : index
    %16 = vector.load %arg10[%c0_8, %c0_9] : memref<16x128xf32, #tpu.memory_space<vmem>>, vector<16x128xf32>
    tpu.vector_store %arg10[%c0_8, %c0_9], %15 {strides = array<i32>} : memref<16x128xf32, #tpu.memory_space<vmem>>, vector<16x128xf32>,
    %c0_i32_10 = arith.constant 0 : i32
    %17 = arith.cmpi eq, %arg2, %c0_i32_10 : i32
    %18 = arith.extui %17 : i1 to i32
    %c0_i32_11 = arith.constant 0 : i32
    %19 = arith.cmpi ne, %18, %c0_i32_11 : i32
    scf.if %19 {
      %c0_12 = arith.constant 0 : index
      %c0_13 = arith.constant 0 : index
      %20 = vector.load %arg10[%c0_12, %c0_13] : memref<16x128xf32, #tpu.memory_space<vmem>>, vector<16x128xf32>
      %c0_14 = arith.constant 0 : index
      %c0_15 = arith.constant 0 : index
      %c0_16 = arith.constant 0 : index
      %21 = vector.load %arg6[%c0_14, %c0_15, %c0_16] : memref<1x1x128xf32, #tpu.memory_space<vmem>>, vector<1x1x128xf32>
      %22 = vector.shape_cast %21 : vector<1x1x128xf32> to vector<1x128xf32>
      %23 = vector.broadcast %22 : vector<1x128xf32> to vector<16x128xf32>
      %24 = arith.addf %20, %23 : vector<16x128xf32>
      %cst_17 = arith.constant 0.000000e+00 : f32
      %25 = vector.broadcast %cst_17 : f32 to vector<16x128xf32>
      %26 = arith.maximumf %24, %25 : vector<16x128xf32>
      %c16_i32_18 = arith.constant 16 : i32
      %27 = arith.muli %arg1, %c16_i32_18 : i32
      %28 = tpu.assume_multiple %27, 16 : i32
      %29 = arith.index_cast %28 : i32 to index
      %c0_19 = arith.constant 0 : index
      %30 = vector.load %arg8[%29, %c0_19] : memref<16x128xf32, #tpu.memory_space<vmem>>, vector<16x128xf32>
      tpu.vector_store %arg8[%29, %c0_19], %26 {strides = array<i32>} : memref<16x128xf32, #tpu.memory_space<vmem>>, vector<16x128xf32>,
      %c0_20 = arith.constant 0 : index
      %c0_21 = arith.constant 0 : index
      %31 = vector.load %arg7[%c0_20, %c0_21] : memref<16x128xf32, #tpu.memory_space<vmem>>, vector<16x128xf32>
      tpu.vector_store %arg7[%c0_20, %c0_21], %26 {strides = array<i32>} : memref<16x128xf32, #tpu.memory_space<vmem>>, vector<16x128xf32>,
    } else {
    }
    return
  }
  func.func @transform_0(%arg0: i32, %arg1: i32, %arg2: i32) -> (i32, i32) {
    %c0_i32 = arith.constant 0 : i32
    return %arg1, %arg2 : i32, i32
  }
  func.func @transform_1(%arg0: i32, %arg1: i32, %arg2: i32) -> (i32, i32) {
    %c0_i32 = arith.constant 0 : i32
    %c0_i32_0 = arith.constant 0 : i32
    %c0_i32_1 = arith.constant 0 : i32
    return %c0_i32, %c0_i32_0 : i32, i32
  }
  func.func @transform_2(%arg0: i32, %arg1: i32, %arg2: i32) -> (i32, i32, i32) {
    %c0_i32 = arith.constant 0 : i32
    %c0_i32_0 = arith.constant 0 : i32
    %c0_i32_1 = arith.constant 0 : i32
    return %arg0, %c0_i32, %c0_i32_0 : i32, i32, i32
  }
  func.func @transform_3(%arg0: i32, %arg1: i32, %arg2: i32) -> (i32, i32, i32) {
    %c0_i32 = arith.constant 0 : i32
    %c0_i32_0 = arith.constant 0 : i32
    %c0_i32_1 = arith.constant 0 : i32
    return %arg0, %c0_i32, %c0_i32_0 : i32, i32, i32
  }
  func.func @transform_4(%arg0: i32, %arg1: i32, %arg2: i32) -> (i32, i32) {
    %c0_i32 = arith.constant 0 : i32
    %c0_i32_0 = arith.constant 0 : i32
    return %arg1, %c0_i32 : i32, i32
  }
}

</mosaic_0001>

<bundles_post_ra>
// kernel: tpu_custom_call.1
= control target key start
LH: loop header
LB: loop body
LE: loop exit
PB: predicated region body
PF: predicated region fallthrough
CT: control target
= control target key end

     0   :  { %9 = vsyncpa [#allocation6], 0  ;;  %s1289_s0 = inlined_call_operand.hbm [shape: f32[16,16], index: 0, kind: input, shape index: {}]   ;;  %s1290_s1 = inlined_call_operand.hbm [shape: f32[16,128], index: 1, kind: input, shape index: {}]   ;;  %s1291_s2 = inlined_call_operand.hbm [shape: f32[2,128,128], index: 2, kind: input, shape index: {}]   ;;  %s1292_s3 = inlined_call_operand.vmem [shape: f32[2,1,128], index: 3, kind: input, shape index: {}]   ;;  %s1293_s4 = inlined_call_operand.hbm [shape: f32[16,128], index: 4, kind: output, shape index: {}]  }
   0x1   :  { %10 = vsyncpa [#allocation9], 0 }
   0x2   :  { %11 = vsyncpa [#allocation7], 0  ;;  %s1041_s15 = smov 0   ;;  %s1043_s16 = smov 0  }
   0x3   :  { %s1045_s17 = smov 0   ;;  %s1047_s18 = smov 0  }
   0x4   :  { %s1049_s19 = smov 0   ;;  %s1051_s20 = smov 0  }
   0x5 LB: > { %s1070_s21 = sadd.s32 4294967295, %s1006_s20   ;;  %p99_p0 = scmp.ne.s32.totalorder %s994_s17, %s990_s16  ;;  %s1006_s20 = sphi %s1051_s20, %s17_s20   ;;  %s1002_s19 = sphi %s1049_s19, %s1313_s19   ;;  %s998_s18 = sphi %s1047_s18, %s1312_s18   ;;  %s994_s17 = sphi %s1045_s17, %s1311_s17   ;;  %s990_s16 = sphi %s1043_s16, %s1310_s16   ;;  %s986_s15 = sphi %s1041_s15, %s1309_s15  }
   0x6   : > { %p100_p1 = scmp.eq.s32.totalorder %s1006_s20, 0  ;;  %p105_p2 = scmp.ne.s32.totalorder %s990_s16, %s986_s15 }
   0x7   : > { %p1294_p3 = scmp.eq.s32.totalorder %s1070_s21, 0  ;;  %p625_p4 = scmp.ge.s32.totalorder %s1006_s20, 1 }
   0x8   : > { %p101_p5 = por %p100_p1, %p99_p0  ;;  %p168_p6 = scmp.lt.s32.totalorder %s1006_s20, 3 }
   0x9   : > { %p1081_p7 = por %p1294_p3, %p105_p2  ;;  %s1008_s24 = smov [#allocation5]  }
   0xa   : > { %p1085_p8 = pnand %p625_p4, %p168_p6  ;;  %s184_s25 = sshll.u32 %s1008_s24, 4  ;;  %s185_s25 = int_to_ptr.vmem [resolvable:$true] %s184_s25 }
   0xb   : > { %s1298_s22 = scalar_select %p1081_p7, 1, 0 }
   0xc   : > { %s1299_s23 = scalar_select %p1085_p8, 1, 0 }
   0xd   : > { %p759_p9 = pneg %p1085_p8  ;;  %p772_p11 = scmp.lt.s32.totalorder %s1006_s20, 2 }
   0xe   : > { %s832_s30 = scalar_lea.hbm %s1289_s0, 256 }
   0xf   : > { %p1093_p10 = pnand %p759_p9, %p1294_p3  ;;  %p1098_p12 = pnand %p772_p11, %p101_p5 }
  0x10   : > { %p833_p13 = scmp.ne.s32.totalorder %s1289_s0, %s832_s30  ;;  %p839_p4 = scmp.lt.u32.totalorder %s832_s30, %s1289_s0 }
  0x11   : > { %s1301_s27 = scalar_select %p1098_p12, 1, 0 }
  0x12   : > { %p834_p0 = pneg %p1093_p10 }
  0x14   : > { %p835_p1 = pnand %p834_p0, %p833_p13 }
  0x16   : > { %p836_p2 = pneg %p835_p1 }
  0x18   : > { %p841_p5 = pnand %p839_p4, %p836_p2 }
  0x1a   : > { %844 = shalt.err (!%p841_p5)
}
  0x1b   : > { %s845_s9 = scalar_lea.vmem %s185_s25, 256  ;;  %p853_p3 = scmp.lt.s32.totalorder %s185_s25, %s185_s25 }
  0x1c   : > { %p846_p6 = scmp.ne.s32.totalorder %s185_s25, %s845_s9  ;;  %p854_p7 = scmp.lt.s32.totalorder %s845_s9, %s845_s9 }
  0x1e   : > { %p848_p9 = pnand %p846_p6, %p834_p0  ;;  %p855_p8 = por %p854_p7, %p853_p3 }
  0x20   : > { %p849_p11 = pneg %p848_p9 }
  0x22   : > { %p856_p12 = pnand %p855_p8, %p849_p11 }
  0x24   : > { %859 = shalt.err (!%p856_p12)
}
  0x25   : > { %s1009_s10 = smov 128   ;;  %s1010_s11 = smov 8  }
  0x26   : > { %762 = dma.hbm_to_vmem [thread:$0]  (!%p1093_p10), %s1289_s0, 256, %s185_s25, [#allocation6], %s1009_s10, %s1009_s10, %s1010_s11  }
  0x27   : > { %s1011_s14 = smov [#allocation8]   ;;  %s860_s29 = scalar_lea.hbm %s1290_s1, 256 }
  0x28   : > { %s197_s15 = sshll.u32 %s1011_s14, 4  ;;  %p861_p3 = scmp.ne.s32.totalorder %s1290_s1, %s860_s29  ;;  %s198_s15 = int_to_ptr.vmem [resolvable:$true] %s197_s15 }
  0x29   : > { %p867_p12 = scmp.lt.u32.totalorder %s860_s29, %s1290_s1 }
  0x2a   : > { %p863_p7 = pnand %p861_p3, %p834_p0 }
  0x2c   : > { %p864_p8 = pneg %p863_p7 }
  0x2e   : > { %p869_p13 = pnand %p867_p12, %p864_p8 }
  0x30   : > { %872 = shalt.err (!%p869_p13)
}
  0x31   : > { %s873_s25 = scalar_lea.vmem %s198_s15, 256  ;;  %p881_p5 = scmp.lt.s32.totalorder %s198_s15, %s198_s15 }
  0x32   : > { %p874_p1 = scmp.ne.s32.totalorder %s198_s15, %s873_s25  ;;  %p882_p6 = scmp.lt.s32.totalorder %s873_s25, %s873_s25 }
  0x34   : > { %p876_p2 = pnand %p874_p1, %p834_p0  ;;  %p883_p9 = por %p882_p6, %p881_p5 }
  0x36   : > { %p877_p4 = pneg %p876_p2 }
  0x38   : > { %p884_p11 = pnand %p883_p9, %p877_p4 }
  0x3a   : > { %887 = shalt.err (!%p884_p11)
}
  0x3b   : > { %765 = dma.hbm_to_vmem [thread:$0]  (!%p1093_p10), %s1290_s1, 256, %s198_s15, [#allocation9], %s1009_s10, %s1009_s10, %s1010_s11  }
  0x3c   : > { %s36_s12 = sadd.s32 1, %s1002_s19  ;;  %s92_s13 = sadd.s32 1, %s994_s17 }
  0x3d   : > { %p38_p0 = scmp.ge.s32.totalorder %s36_s12, 2  ;;  %s211_s14 = sand.u32 1, %s1006_s20  }
  0x3e   : > { %s213_s26 = sand.u32 1, %s994_s17   ;;  %s644_s28 = sshll.u32 %s1002_s19, 11 }
  0x3f   : > { %s1315_s12 = smov (%p38_p0, %s36_s12), 0  ;;  %s629_s24 = sshll.u32 %s213_s26, 7 }
  0x40   : > { %s89_s29 = ssub.s32 %s1002_s19, %s1315_s12  ;;  %s1162_s6 = scalar_lea.hbm %s1291_s2, %s644_s28 }
  0x41   : > { %p90_p3 = scmp.eq.s32.totalorder %s89_s29, 0  ;;  %s215_s15 = scalar_lea.vmem [#allocation10], %s629_s24 }
  0x42   : > { %s222_s7 = sshll.u32 %s215_s15, 4  ;;  %s1169_s8 = scalar_lea.sflag [#allocation6], %s211_s14  ;;  %s1167_s7 = int_to_ptr.vmem [resolvable:$true] %s222_s7 }
  0x43   : > { %s1165_s25 = scalar_select %p90_p3, %s994_s17, %s92_s13  }
  0x44   : > { %s888_s9 = scalar_lea.hbm %s1162_s6, 2048  ;;  %p1302_p7 = scmp.ne.s32.totalorder %s1301_s27, 0 }
  0x45   : > { %p889_p10 = scmp.ne.s32.totalorder %s1162_s6, %s888_s9  ;;  %s893_s29 = scalar_lea.hbm %s1291_s2, 4096 }
  0x46   : > { %p890_p8 = pneg %p1302_p7  ;;  %p894_p1 = scmp.lt.u32.totalorder %s1162_s6, %s1291_s2 }
  0x47   : > { %p895_p2 = scmp.lt.u32.totalorder %s893_s29, %s888_s9  ;;  %p897_p5 = scmp.lt.u32.totalorder %s888_s9, %s1162_s6 }
  0x48   : > { %p891_p12 = pnand %p890_p8, %p889_p10 }
  0x49   : > { %p896_p4 = por %p895_p2, %p894_p1 }
  0x4a   : > { %p892_p13 = pneg %p891_p12 }
  0x4b   : > { %p898_p6 = por %p897_p5, %p896_p4 }
  0x4d   : > { %p899_p9 = pnand %p898_p6, %p892_p13 }
  0x4f   : > { %902 = shalt.err (!%p899_p9)
}
  0x50   : > { %s903_s13 = scalar_lea.vmem %s1167_s7, 2048  ;;  %s1012_s14 = smov [#allocation10]  }
  0x51   : > { %p904_p11 = scmp.ne.s32.totalorder %s1167_s7, %s903_s13  ;;  %s908_s5 = sshll.u32 %s1012_s14, 4  ;;  %s909_s5 = int_to_ptr.vmem [resolvable:$false] %s908_s5 }
  0x52   : > { %s910_s15 = scalar_lea.vmem %s909_s5, 4096  ;;  %p911_p10 = scmp.lt.s32.totalorder %s1167_s7, %s909_s5 }
  0x53   : > { %p906_p0 = pnand %p904_p11, %p890_p8  ;;  %p912_p12 = scmp.lt.s32.totalorder %s910_s15, %s903_s13 }
  0x55   : > { %p907_p3 = pneg %p906_p0  ;;  %p913_p1 = por %p912_p12, %p911_p10 }
  0x57   : > { %p914_p2 = pnand %p913_p1, %p907_p3 }
  0x59   : > { %917 = shalt.err (!%p914_p2)
}
  0x5a   : > { %769 = dma.hbm_to_vmem [thread:$0]  (!%p1302_p7), %s1162_s6, 2048, %s1167_s7, %s1169_s8, %s1009_s10, %s1009_s10, %s1010_s11  }
  0x5b   : > { %p1303_p8 = scmp.ne.s32.totalorder %s1299_s23, 0 }
  0x5c   : > { %p1304_p13 = scmp.eq.s32.totalorder (!%p1303_p8), %s1070_s21, 0 }
  0x5d   : > { %240 = sbr.rel (%p1303_p8) target bundleno = 607 (0x25f), region = 36 }
  0x64   : > { %969 = dma.done.wait (%p1304_p13), [#allocation6], 256   ;;  %p1305_p4 = pmov %p1304_p13 }
  0x66   : > { %971 = vsyncadd (%p1305_p4), [#allocation6], 4294967040  ;;  %p1306_p5 = pmov %p1305_p4 }
  0x67   : > { %p1307_p6 = pmov %p1305_p4 }
  0x68   : > { %973 = dma.done.wait (%p1306_p5), [#allocation9], 256  }
  0x69   : > { %975 = vsyncadd (%p1307_p6), [#allocation9], 4294967040  ;;  %s250_s27 = sand.u32 1, %s1070_s21   ;;  %s252_s10 = sand.u32 1, %s990_s16  }
  0x6a   : > { %s635_s11 = sshll.u32 %s252_s10, 7  ;;  %s251_s23 = scalar_lea.sflag [#allocation6], %s250_s27 }
  0x6b   : > { %s1212_s6 = scalar_lea.vmem [#allocation10], %s635_s11  ;;  %p1308_p7 = scmp.ne.s32.totalorder %s1298_s22, 0 }
  0x6d   : > { %977 = dma.done.wait (%p1308_p7), %s251_s23, 2048  }
  0x6e   : > { %979 = vsyncadd (%p1308_p7), %s251_s23, 4294965248  ;;  %p278_p9 = scmp.lt.s32.totalorder %s998_s18, 1  ;;  %p636_p11 = scmp.ne.s32.totalorder %s998_s18, 0 }
  0x6f   : > { %v292_v0 = vld [vmem:[#allocation8] sm:$0xff] (!%p636_p11)  ;;  %v293_v1 = vld [vmem:[#allocation8 + $0x8] sm:$0xff] (!%p636_p11) }
  0x70   : > { %s1220_s7 = scalar_select %p278_p9, %s998_s18, 1 }
  0x71   : > { %291 = sbr.rel (%p636_p11) target bundleno = 120 (0x78), region = 56  ;;  %294 = vst [vmem:[#allocation2] sm:$0xff] (!%p636_p11), %v292_v0  ;;  %295 = vst [vmem:[#allocation2 + $0x8] sm:$0xff] (!%p636_p11), %v293_v1 }
  0x72   : > { %s280_s26 = scalar_lea.vmem %s1292_s3, %s1220_s7 }
  0x78 PF: > { %v298_v2 = vld [vmem:[%s1212_s6] sm:$0xff]  ;;  %v299_v3 = vld [vmem:[%s1212_s6 + $0x8] sm:$0xff]  ;;  %v300_v4 = vld [vmem:[%s1212_s6 + $0x10] sm:$0xff]  ;;  %vm404_vm0 = vcmask 130048   ;;  %s1013_s28 = smov [#allocation11]   ;;  %p775_p0 = scmp.eq.s32.totalorder %s1070_s21, 1 }
  0x79   : > { %v709_v5 = vpack.c.bf16 %v299_v3, %v298_v2  ;;  %v301_v6 = vld [vmem:[%s1212_s6 + $0x18] sm:$0xff]  ;;  %v302_v8 = vld [vmem:[%s1212_s6 + $0x20] sm:$0xff]  ;;  %v303_v9 = vld [vmem:[%s1212_s6 + $0x28] sm:$0xff]  ;;  %s521_s29 = sshll.u32 %s1013_s28, 4  ;;  %s522_s29 = int_to_ptr.vmem [resolvable:$true] %s521_s29 }
  0x7a   : > { %v713_v7 = vpack.c.bf16 %v301_v6, %v300_v4  ;;  %v717_v10 = vpack.c.bf16 %v303_v9, %v302_v8  ;;  %v296_v11 = vld [vmem:[#allocation2] sm:$0xff]  ;;  %v305_v13 = vld [vmem:[%s1212_s6 + $0x38] sm:$0xff]  ;;  %v306_v15 = vld [vmem:[%s1212_s6 + $0x40] sm:$0xff]  ;;  %s918_s24 = scalar_lea.vmem %s522_s29, 256  ;;  %p925_p1 = scmp.lt.s32.totalorder %s522_s29, %s522_s29 }
  0x7b   : > { %710 = vmatprep.subr.bf16.mxu0 %v709_v5  ;;  %v304_v12 = vld [vmem:[%s1212_s6 + $0x30] sm:$0xff]  ;;  %699 = vmatprep.mubr.f32.mxu0 %v296_v11  ;;  %v307_v16 = vld [vmem:[%s1212_s6 + $0x48] sm:$0xff]  ;;  %v309_v19 = vld [vmem:[%s1212_s6 + $0x58] sm:$0xff]  ;;  %p919_p3 = scmp.ne.s32.totalorder %s522_s29, %s918_s24  ;;  %p926_p2 = scmp.lt.s32.totalorder %s918_s24, %s918_s24 }
  0x7c   : > { %712 = vmatpush3.bf16.msra.mxu0 %v709_v5  ;;  %v721_v14 = vpack.c.bf16 %v305_v13, %v304_v12  ;;  %v725_v17 = vpack.c.bf16 %v307_v16, %v306_v15  ;;  %v308_v18 = vld [vmem:[%s1212_s6 + $0x50] sm:$0xff]  ;;  %v310_v21 = vld [vmem:[%s1212_s6 + $0x60] sm:$0xff]  ;;  %v311_v22 = vld [vmem:[%s1212_s6 + $0x68] sm:$0xff] }
  0x7d   : > { %714 = vmatprep.subr.bf16.mxu0 %v713_v7  ;;  %v729_v20 = vpack.c.bf16 %v309_v19, %v308_v18  ;;  %v733_v23 = vpack.c.bf16 %v311_v22, %v310_v21  ;;  %v312_v24 = vld [vmem:[%s1212_s6 + $0x70] sm:$0xff]  ;;  %v313_v25 = vld [vmem:[%s1212_s6 + $0x78] sm:$0xff]  ;;  %v399_v28 = vld [vmem:[#allocation5] sm:$0xff]  ;;  %p920_p10 = pnand %p919_p3, %p775_p0  ;;  %p927_p8 = por %p926_p2, %p925_p1 }
  0x7e   : > { %v737_v26 = vpack.c.bf16 %v313_v25, %v312_v24  ;;  %v297_v27 = vld [vmem:[#allocation2 + $0x8] sm:$0xff]  ;;  %706 = vmatprep.mubr.msk.f32.mxu1 %vm404_vm0, %v399_v28  ;;  %v400_v32 = vld [vmem:[#allocation5 + $0x8] sm:$0xff]  ;;  %v639_v33 = vld [vmem:[%s280_s26] ss:$0 sm:$0xff] }
  0x7f   : > { %p921_p12 = pneg %p920_p10 }
  0x80   : > { %716 = vmatpush3.bf16.msra.mxu0 %v713_v7 }
  0x81   : > { %718 = vmatprep.subr.bf16.mxu0 %v717_v10  ;;  %p928_p13 = pnand %p927_p8, %p921_p12 }
  0x84   : > { %720 = vmatpush3.bf16.msra.mxu0 %v717_v10 }
  0x85   : > { %722 = vmatprep.subr.bf16.mxu0 %v721_v14 }
  0x88   : > { %724 = vmatpush3.bf16.msra.mxu0 %v721_v14 }
  0x89   : > { %726 = vmatprep.subr.bf16.mxu0 %v725_v17 }
  0x8c   : > { %728 = vmatpush3.bf16.msra.mxu0 %v725_v17 }
  0x8d   : > { %730 = vmatprep.subr.bf16.mxu0 %v729_v20 }
  0x90   : > { %732 = vmatpush3.bf16.msra.mxu0 %v729_v20 }
  0x91   : > { %734 = vmatprep.subr.bf16.mxu0 %v733_v23 }
  0x94   : > { %736 = vmatpush3.bf16.msra.mxu0 %v733_v23 }
  0x95   : > { %738 = vmatprep.subr.bf16.mxu0 %v737_v26 }
  0x98   : > { %740 = vmatpush3.bf16.msra.mxu0 %v737_v26 }
  0x9b   : > { %700 = vmatmul.mubr.f32.vlgmr.msra.gmra.mrb[0].mxu0 %v297_v27 }
 0x16e   : > { %v701_v29 = vpop.f32.mrb[0].mxu0 }
 0x16f   : > { %v380_v30 = vpop.f32.mrb[1].mxu0 }
 0x170   : > { %v741_v31 = vpack.c.bf16 %v701_v29, %v380_v30 }
 0x172   : > { %742 = vmatprep.subr.bf16.mxu1 %v741_v31 }
 0x173   : > { %744 = vmatpush3.bf16.msra.mxu1 %v741_v31 }
 0x176   : > { %707 = vmatmul.mubr.msk.f32.vlgmr.msra.gmra.mrb[0].mxu1 %vm404_vm0, %v400_v32 }
 0x249   : > { %v708_v34 = vpop.f32.mrb[0].mxu1 }
 0x24a   : > { %v503_v35 = vadd.f32 %v708_v34, %v639_v33  ;;  %v477_v36 = vpop.f32.mrb[1].mxu1 }
 0x24b   : > { %v502_v37 = vadd.f32 %v639_v33, %v477_v36 }
 0x24c   : > { %v505_v38 = vmax.f32 %v503_v35, 0.0 }
 0x24d   : > { %v504_v39 = vmax.f32 %v502_v37, 0.0 }
 0x24e   : > { %509 = vst [vmem:[#allocation2 + $0x8] sm:$0xff] %v505_v38  ;;  %511 = vst [vmem:[#allocation11 + $0x8] sm:$0xff] %v505_v38 }
 0x24f   : > { %508 = vst [vmem:[#allocation2] sm:$0xff] %v504_v39  ;;  %510 = vst [vmem:[#allocation11] sm:$0xff] %v504_v39 }
 0x250   : > { %931 = shalt.err (!%p928_p13)
}
 0x251   : > { %s932_s14 = scalar_lea.hbm %s1293_s4, 256 }
 0x252   : > { %p933_p4 = scmp.ne.s32.totalorder %s1293_s4, %s932_s14  ;;  %p938_p7 = scmp.lt.u32.totalorder %s932_s14, %s1293_s4 }
 0x254   : > { %p934_p5 = pnand %p933_p4, %p775_p0 }
 0x256   : > { %p935_p6 = pneg %p934_p5 }
 0x258   : > { %p940_p9 = pnand %p938_p7, %p935_p6 }
 0x25a   : > { %943 = shalt.err (!%p940_p9)
}
 0x25b   : > { %s1014_s11 = smov 128   ;;  %s1015_s23 = smov 8  }
 0x25c   : > { %756 = dma.vmem_to_hbm [thread:$0]  (%p775_p0), %s522_s29, 256, %s1293_s4, [#allocation7], %s1014_s11, %s1014_s11, %s1015_s23  }
 0x25d   : > { %981 = dma.done.wait (%p775_p0), [#allocation7], 256  }
 0x25e   : > { %983 = vsyncadd (%p775_p0), [#allocation7], 4294967040 }
 0x25f PF: > { %s17_s20 = sadd.s32 1, %s1006_s20   ;;  %s1309_s15 = smov %s990_s16 }
 0x260   : > { %p14_p11 = scmp.ge.s32.totalorder %s17_s20, 4   ;;  %s1310_s16 = smov %s994_s17 }
 0x261   : > { %s1311_s17 = smov %s1165_s25  ;;  %s1312_s18 = smov %s1002_s19 }
 0x262   : > { %s1313_s19 = smov %s1315_s12  ;;  %16 = sbr.rel (!%p14_p11) target bundleno = 5 (0x5), region = 103 }
 0x269   :  { %537 = vsyncpa [#allocation6], 1 }
 0x26a   :  { %539 = vsyncpa [#allocation6 + $0x1], 1 }
 0x26b   :  { %540 = vsyncpa [#allocation9], 1 }
 0x26c   :  { %541 = vsyncpa [#allocation7], 1 }
 0x26d   :  { %543 = vsyncpa [#allocation7 + $0x1], 1 }

</bundles_post_ra>
